<compile_context>
chip_gen: v5e
topology: v5e:2x2
jax: 0.10.0
libtpu: 0.0.40
codegen_flags: <defaults>
</compile_context>

<pallas_src>
import functools

import jax
import jax.numpy as jnp
from jax import lax
from jax.experimental import pallas as pl
from jax.experimental.pallas import tpu as pltpu


_SUB = 256    # in-kernel HW sub-tile width (lanes) fed to each one-hot matmul
_KCH = 128    # K chunk width per matmul; keeps one-hot operand at (256, 128)


def _reg_l1_kernel(ind_ref,    # VMEM (1, 1, Kp)     int32
                   feat_ref,   # VMEM (1, C, hw_blk) f32   channel-major feature block
                   mask_ref,   # VMEM (1, 1, Kp)     f32
                   tgt_ref,    # VMEM (1, C, Kp)     f32   target pre-transposed to (B, C, Kp)
                   out_ref,    # VMEM (1, 1, 1)      f32   per-batch partial sum of |diff|*m
                   pred_acc,   # VMEM (C, Kp)        f32   gathered-pred accumulator (scratch)
                   *, sub, kch):
    h = pl.program_id(1)
    hw_blk = feat_ref.shape[2]
    kp = ind_ref.shape[2]
    n_sub = hw_blk // sub
    n_kch = kp // kch

    @pl.when(h == 0)
    def _():
        pred_acc[...] = jnp.zeros_like(pred_acc)

    # Indices relative to the start of this HW block (K-element subtract, once per block).
    ind_blk = ind_ref[0] - h * hw_blk                          # (1, Kp) int32

    def sub_tile(s, carry):
        off = pl.multiple_of(s * sub, sub)
        lo = ind_blk - off                                     # (1, Kp) local indices
        for kc in range(n_kch):
            lo_c = lo[:, kc * kch:(kc + 1) * kch]              # (1, kch)
            hit = jnp.any((lo_c >= 0) & (lo_c < sub))          # cheap K-element hit test

            @pl.when(hit)
            def _(lo_c=lo_c, off=off, kc=kc):
                # one_hot[t, j] = (t == ind[j] - tile_offset); exact 0/1 values.
                row_ids = lax.broadcasted_iota(jnp.int32, (sub, kch), 0)
                one_hot = (row_ids == lo_c).astype(jnp.float32)        # (sub, kch)
                tile = feat_ref[0, :, pl.ds(off, sub)]                 # (C, sub)
                pred_acc[:, kc * kch:(kc + 1) * kch] += jnp.dot(
                    tile, one_hot,
                    preferred_element_type=jnp.float32,
                    precision=lax.Precision.HIGHEST)
        return carry

    lax.fori_loop(0, n_sub, sub_tile, 0, unroll=min(n_sub, 8))

    @pl.when(h == pl.num_programs(1) - 1)
    def _():
        m = mask_ref[0]                                        # (1, Kp) broadcasts over C
        diff = jnp.abs(pred_acc[...] - tgt_ref[0]) * m         # mask >= 0 => == |p*m - t*m|
        out_ref[...] = jnp.full(out_ref.shape, jnp.sum(diff), jnp.float32)


def _round_up(x, m):
    return (x + m - 1) // m * m


def _pick_hw_block(hwp, c):
    # Largest power-of-two block (multiple of _SUB) that divides padded HW and keeps the
    # double-buffered feature stream <= ~8 MiB (safe under v5e's 16 MiB default scoped VMEM,
    # and under the 32 MiB defaults on v6e/v7x).
    budget = 8 * 1024 * 1024
    for cand in (8192, 4096, 2048, 1024, 512, 256):
        if hwp % cand == 0 and 2 * c * cand * 4 <= budget:
            return cand
    return 256


def reg_l1_loss(output, mask, ind, target):
    """output: (B, C, H, W) f32; mask: (B, K); ind: (B, K) int; target: (B, K, C) f32."""
    B, C, H, W = output.shape
    K = ind.shape[1]
    HW = H * W

    Kp = _round_up(max(K, 1), _KCH)
    HWp = _round_up(HW, _SUB)
    hw_blk = _pick_hw_block(HWp, C)

    # Channel-major plumbing only — the reshape is free; no full feature-map transpose.
    feat = output.reshape(B, C, HW).astype(jnp.float32)
    if HWp != HW:                      # rare: only if H*W is not a multiple of 256
        feat = jnp.pad(feat, ((0, 0), (0, 0), (0, HWp - HW)))

    ind3 = ind.reshape(B, 1, K).astype(jnp.int32)
    mask3 = mask.reshape(B, 1, K).astype(jnp.float32)
    tgt = target.astype(jnp.float32)
    if Kp != K:                        # lane-dense padding: ind=0, mask=0, target=0
        ind3 = jnp.pad(ind3, ((0, 0), (0, 0), (0, Kp - K)))
        mask3 = jnp.pad(mask3, ((0, 0), (0, 0), (0, Kp - K)))
        tgt = jnp.pad(tgt, ((0, 0), (0, Kp - K), (0, 0)))
    tgt_t = jnp.transpose(tgt, (0, 2, 1))                      # (B, C, Kp): tiny

    kernel = functools.partial(_reg_l1_kernel, sub=_SUB, kch=_KCH)

    partials = pl.pallas_call(
        kernel,
        out_shape=jax.ShapeDtypeStruct((B, 1, 1), jnp.float32),
        grid_spec=pltpu.PrefetchScalarGridSpec(
            num_scalar_prefetch=0,
            grid=(B, HWp // hw_blk),                           # HW (reduction) axis last
            in_specs=[
                pl.BlockSpec((1, 1, Kp),     lambda b, h: (b, 0, 0)),  # ind   (resident)
                pl.BlockSpec((1, C, hw_blk), lambda b, h: (b, 0, h)),  # feat  (streamed)
                pl.BlockSpec((1, 1, Kp),     lambda b, h: (b, 0, 0)),  # mask  (resident)
                pl.BlockSpec((1, C, Kp),     lambda b, h: (b, 0, 0)),  # target(resident)
            ],
            out_specs=pl.BlockSpec((1, 1, 1), lambda b, h: (b, 0, 0)),
            scratch_shapes=[pltpu.VMEM((C, Kp), jnp.float32)],
        ),
        compiler_params=pltpu.CompilerParams(
            # Per-batch partial outputs make the batch axis safely parallel (v7x dual-TC).
            dimension_semantics=("parallel", "arbitrary")),
    )(ind3, feat, mask3, tgt_t)

    # PyTorch takes mask.sum() AFTER expand_as(pred) -> each entry counted C times.
    denom = jnp.sum(mask.astype(jnp.float32)) * jnp.float32(C) + jnp.float32(1e-4)
    return jnp.sum(partials) / denom


def reg_l1_loss_ref(output, mask, ind, target):
    """Pure-JAX reference with identical semantics (validation only)."""
    B, C, H, W = output.shape
    feat = jnp.transpose(output, (0, 2, 3, 1)).reshape(B, H * W, C)
    pred = jnp.take_along_axis(feat, ind[:, :, None].astype(jnp.int32), axis=1)  # (B, K, C)
    m = mask[:, :, None].astype(jnp.float32) * jnp.ones_like(pred)
    loss = jnp.sum(jnp.abs(pred * m - target * m))
    return loss / (jnp.sum(m) + 1e-4)


if __name__ == "__main__":
    B, C, H, W, K = 2, 4, 16, 16, 8
    key = jax.random.PRNGKey(0)
    k1, k2, k3, k4 = jax.random.split(key, 4)

    output = jax.random.normal(k1, (B, C, H, W), dtype=jnp.float32)
    ind = jax.random.randint(k2, (B, K), 0, H * W, dtype=jnp.int32)
    mask = jax.random.bernoulli(k3, 0.7, (B, K)).astype(jnp.float32)
    target = jax.random.normal(k4, (B, K, C), dtype=jnp.float32)

    out = jax.block_until_ready(reg_l1_loss(output, mask, ind, target))
    ref = jax.block_until_ready(reg_l1_loss_ref(output, mask, ind, target))

    assert jnp.allclose(out, ref, rtol=1e-5, atol=1e-5), (out, ref)
    print("KERNEL_OK")
</pallas_src>

<mosaic_0001>
module attributes {stable_mosaic.version = 11 : i64} {
  func.func @_reg_l1_kernel(%arg0: i32, %arg1: i32, %arg2: memref<1x1x128xi32, #tpu.memory_space<vmem>>, %arg3: memref<1x4x256xf32, #tpu.memory_space<vmem>>, %arg4: memref<1x1x128xf32, #tpu.memory_space<vmem>>, %arg5: memref<1x4x128xf32, #tpu.memory_space<vmem>>, %arg6: memref<1x1x1xf32, #tpu.memory_space<vmem>>, %arg7: memref<4x128xf32, #tpu.memory_space<vmem>>) attributes {dimension_semantics = [#tpu.dimension_semantics<parallel>, #tpu.dimension_semantics<arbitrary>], iteration_bounds = array<i64: 2, 1>, scalar_prefetch = 0 : i64, scratch_operands = 1 : i64, tpu.core_type = #tpu.core_type<tc>, window_params = [{transform_indices = @transform_0, window_bounds = array<i64: 1, 1, 128>}, {transform_indices = @transform_1, window_bounds = array<i64: 1, 4, 256>}, {transform_indices = @transform_2, window_bounds = array<i64: 1, 1, 128>}, {transform_indices = @transform_3, window_bounds = array<i64: 1, 4, 128>}, {transform_indices = @transform_4, window_bounds = array<i64: 1, 1, 1>}]} {
    %c0_i32 = arith.constant 0 : i32
    %0 = arith.cmpi eq, %arg1, %c0_i32 : i32
    %1 = arith.extui %0 : i1 to i32
    %c0_i32_0 = arith.constant 0 : i32
    %2 = arith.cmpi ne, %1, %c0_i32_0 : i32
    scf.if %2 {
      %cst_13 = arith.constant 0.000000e+00 : f32
      %30 = vector.broadcast %cst_13 : f32 to vector<4x128xf32>
      %c0_14 = arith.constant 0 : index
      %c0_15 = arith.constant 0 : index
      %31 = vector.load %arg7[%c0_14, %c0_15] : memref<4x128xf32, #tpu.memory_space<vmem>>, vector<4x128xf32>
      tpu.vector_store %arg7[%c0_14, %c0_15], %30 {strides = array<i32>} : memref<4x128xf32, #tpu.memory_space<vmem>>, vector<4x128xf32>,
    } else {
    }
    %c0 = arith.constant 0 : index
    %c0_1 = arith.constant 0 : index
    %c0_2 = arith.constant 0 : index
    %3 = vector.load %arg2[%c0, %c0_1, %c0_2] : memref<1x1x128xi32, #tpu.memory_space<vmem>>, vector<1x1x128xi32>
    %4 = vector.shape_cast %3 : vector<1x1x128xi32> to vector<1x128xi32>
    %c256_i32 = arith.constant 256 : i32
    %5 = arith.muli %arg1, %c256_i32 : i32
    %6 = vector.broadcast %5 : i32 to vector<1x128xi32>
    %7 = arith.subi %4, %6 : vector<1x128xi32>
    %c0_i32_3 = arith.constant 0 : i32
    %c256_i32_4 = arith.constant 256 : i32
    %8 = arith.muli %c0_i32_3, %c256_i32_4 : i32
    %9 = tpu.assume_multiple %8, 256 : i32
    %10 = vector.broadcast %9 : i32 to vector<1x128xi32>
    %11 = arith.subi %7, %10 : vector<1x128xi32>
    %c0_i32_5 = arith.constant 0 : i32
    %12 = vector.broadcast %c0_i32_5 : i32 to vector<1x128xi32>
    %13 = arith.cmpi sge, %11, %12 : vector<1x128xi32>
    %c256_i32_6 = arith.constant 256 : i32
    %14 = vector.broadcast %c256_i32_6 : i32 to vector<1x128xi32>
    %15 = arith.cmpi slt, %11, %14 : vector<1x128xi32>
    %16 = arith.andi %13, %15 : vector<1x128xi1>
    %cst = arith.constant 1.000000e+00 : f32
    %cst_7 = arith.constant 0.000000e+00 : f32
    %17 = vector.broadcast %cst : f32 to vector<1x128xf32>
    %18 = vector.broadcast %cst_7 : f32 to vector<1x128xf32>
    %19 = arith.select %16, %17, %18 : vector<1x128xi1>, vector<1x128xf32>
    %20 = vector.shape_cast %19 : vector<1x128xf32> to vector<1x1x128xf32>
    %cst_8 = arith.constant dense<0xFF800000> : vector<1xf32>
    %21 = vector.multi_reduction <maximumf>, %20, %cst_8 [1, 2] : vector<1x1x128xf32> to vector<1xf32>
    %22 = vector.shape_cast %21 : vector<1xf32> to vector<1x1x1xf32>
    %23 = vector.extract %22[0, 0, 0] : f32 from vector<1x1x1xf32>
    %cst_9 = arith.constant 0.000000e+00 : f32
    %24 = arith.cmpf ogt, %23, %cst_9 : f32
    %25 = arith.extui %24 : i1 to i32
    %c0_i32_10 = arith.constant 0 : i32
    %26 = arith.cmpi ne, %25, %c0_i32_10 : i32
    scf.if %26 {
      %30 = tpu.iota {dimensions = array<i32: 0>} : vector<256x128xi32>
      %31 = vector.broadcast %11 : vector<1x128xi32> to vector<256x128xi32>
      %32 = arith.cmpi eq, %30, %31 : vector<256x128xi32>
      %33 = arith.extui %32 : vector<256x128xi1> to vector<256x128xi32>
      %34 = arith.sitofp %33 : vector<256x128xi32> to vector<256x128xf32>
      %c0_13 = arith.constant 0 : index
      %c0_14 = arith.constant 0 : index
      %35 = arith.index_cast %9 : i32 to index
      %36 = vector.load %arg3[%c0_13, %c0_14, %35] : memref<1x4x256xf32, #tpu.memory_space<vmem>>, vector<1x4x256xf32>
      %37 = vector.shape_cast %36 : vector<1x4x256xf32> to vector<4x256xf32>
      %c0_15 = arith.constant 0 : index
      %c0_16 = arith.constant 0 : index
      %38 = vector.load %arg7[%c0_15, %c0_16] : memref<4x128xf32, #tpu.memory_space<vmem>>, vector<4x128xf32>
      %cst_17 = arith.constant dense<0.000000e+00> : vector<4x128xf32>
      %39 = tpu.matmul %37, %34, %cst_17 {dimension_numbers = #tpu.dot_dimension_numbers<[1], [0], [0], [1], [0, 0, 1, 1], [], []>, precision = #tpu.contract_precision<fp32>} : vector<4x256xf32>, vector<256x128xf32>, vector<4x128xf32> -> vector<4x128xf32>
      %40 = arith.addf %38, %39 : vector<4x128xf32>
      %c0_18 = arith.constant 0 : index
      %c0_19 = arith.constant 0 : index
      %41 = vector.load %arg7[%c0_18, %c0_19] : memref<4x128xf32, #tpu.memory_space<vmem>>, vector<4x128xf32>
      tpu.vector_store %arg7[%c0_18, %c0_19], %40 {strides = array<i32>} : memref<4x128xf32, #tpu.memory_space<vmem>>, vector<4x128xf32>,
    } else {
    }
    %c1_i32 = arith.constant 1 : i32
    %c0_i32_11 = arith.constant 0 : i32
    %27 = arith.cmpi eq, %arg1, %c0_i32_11 : i32
    %28 = arith.extui %27 : i1 to i32
    %c0_i32_12 = arith.constant 0 : i32
    %29 = arith.cmpi ne, %28, %c0_i32_12 : i32
    scf.if %29 {
      %c0_13 = arith.constant 0 : index
      %c0_14 = arith.constant 0 : index
      %c0_15 = arith.constant 0 : index
      %30 = vector.load %arg4[%c0_13, %c0_14, %c0_15] : memref<1x1x128xf32, #tpu.memory_space<vmem>>, vector<1x1x128xf32>
      %31 = vector.shape_cast %30 : vector<1x1x128xf32> to vector<1x128xf32>
      %c0_16 = arith.constant 0 : index
      %c0_17 = arith.constant 0 : index
      %32 = vector.load %arg7[%c0_16, %c0_17] : memref<4x128xf32, #tpu.memory_space<vmem>>, vector<4x128xf32>
      %c0_18 = arith.constant 0 : index
      %c0_19 = arith.constant 0 : index
      %c0_20 = arith.constant 0 : index
      %33 = vector.load %arg5[%c0_18, %c0_19, %c0_20] : memref<1x4x128xf32, #tpu.memory_space<vmem>>, vector<1x4x128xf32>
      %34 = vector.shape_cast %33 : vector<1x4x128xf32> to vector<4x128xf32>
      %35 = arith.subf %32, %34 : vector<4x128xf32>
      %36 = math.absf %35 : vector<4x128xf32>
      %37 = vector.broadcast %31 : vector<1x128xf32> to vector<4x128xf32>
      %38 = arith.mulf %36, %37 : vector<4x128xf32>
      %39 = vector.shape_cast %38 : vector<4x128xf32> to vector<1x4x128xf32>
      %cst_21 = arith.constant dense<0.000000e+00> : vector<1xf32>
      %40 = vector.multi_reduction <add>, %39, %cst_21 [1, 2] : vector<1x4x128xf32> to vector<1xf32>
      %41 = vector.shape_cast %40 : vector<1xf32> to vector<1x1x1xf32>
      %42 = vector.extract %41[0, 0, 0] : f32 from vector<1x1x1xf32>
      %43 = vector.broadcast %42 : f32 to vector<1x1x1xf32>
      %c0_22 = arith.constant 0 : index
      %c0_23 = arith.constant 0 : index
      %c0_24 = arith.constant 0 : index
      %44 = vector.load %arg6[%c0_22, %c0_23, %c0_24] : memref<1x1x1xf32, #tpu.memory_space<vmem>>, vector<1x1x1xf32>
      tpu.vector_store %arg6[%c0_22, %c0_23, %c0_24], %43 {strides = array<i32>} : memref<1x1x1xf32, #tpu.memory_space<vmem>>, vector<1x1x1xf32>,
    } else {
    }
    return
  }
  func.func @transform_0(%arg0: i32, %arg1: i32) -> (i32, i32, i32) {
    %c0_i32 = arith.constant 0 : i32
    %c0_i32_0 = arith.constant 0 : i32
    %c0_i32_1 = arith.constant 0 : i32
    return %arg0, %c0_i32, %c0_i32_0 : i32, i32, i32
  }
  func.func @transform_1(%arg0: i32, %arg1: i32) -> (i32, i32, i32) {
    %c0_i32 = arith.constant 0 : i32
    %c0_i32_0 = arith.constant 0 : i32
    return %arg0, %c0_i32, %arg1 : i32, i32, i32
  }
  func.func @transform_2(%arg0: i32, %arg1: i32) -> (i32, i32, i32) {
    %c0_i32 = arith.constant 0 : i32
    %c0_i32_0 = arith.constant 0 : i32
    %c0_i32_1 = arith.constant 0 : i32
    return %arg0, %c0_i32, %c0_i32_0 : i32, i32, i32
  }
  func.func @transform_3(%arg0: i32, %arg1: i32) -> (i32, i32, i32) {
    %c0_i32 = arith.constant 0 : i32
    %c0_i32_0 = arith.constant 0 : i32
    %c0_i32_1 = arith.constant 0 : i32
    return %arg0, %c0_i32, %c0_i32_0 : i32, i32, i32
  }
  func.func @transform_4(%arg0: i32, %arg1: i32) -> (i32, i32, i32) {
    %c0_i32 = arith.constant 0 : i32
    %c0_i32_0 = arith.constant 0 : i32
    %c0_i32_1 = arith.constant 0 : i32
    return %arg0, %c0_i32, %c0_i32_0 : i32, i32, i32
  }
}

</mosaic_0001>

<bundles_post_ra>
// kernel: tpu_custom_call.1
= control target key start
LH: loop header
LB: loop body
LE: loop exit
PB: predicated region body
PF: predicated region fallthrough
CT: control target
= control target key end

     0   :  { %9 = vsyncpa [#allocation4], 0  ;;  %s2925_s0 = inlined_call_operand.hbm [shape: s32[2,1,128], index: 0, kind: input, shape index: {}]   ;;  %s2926_s1 = inlined_call_operand.hbm [shape: f32[2,4,256], index: 1, kind: input, shape index: {}]   ;;  %s2927_s2 = inlined_call_operand.hbm [shape: f32[2,1,128], index: 2, kind: input, shape index: {}]   ;;  %s2928_s3 = inlined_call_operand.hbm [shape: f32[2,4,128], index: 3, kind: input, shape index: {}]   ;;  %s2929_s4 = inlined_call_operand.vmem [shape: f32[2,1,1], index: 4, kind: output, shape index: {}]  }
   0x1   :  { %11 = vsyncpa [#allocation4 + $0x1], 0 }
   0x2   :  { %12 = vsyncpa [#allocation6], 0 }
   0x3   :  { %14 = vsyncpa [#allocation6 + $0x1], 0 }
   0x4   :  { %15 = vsyncpa [#allocation9], 0 }
   0x5   :  { %17 = vsyncpa [#allocation9 + $0x1], 0  ;;  %s1772_s15 = smov 0   ;;  %s1774_s16 = smov 0  }
   0x6   :  { %s1776_s17 = smov 0   ;;  %s1778_s18 = smov 0  }
   0x7   :  { %s1780_s19 = smov 0   ;;  %s1782_s20 = smov 0  }
   0x8 LB: > { %s2930_s21 = sadd.s32 4294967295, %s1742_s20   ;;  %s35_s22 = sadd.s32 1, %s1738_s19  ;;  %s1742_s20 = sphi %s1782_s20, %s23_s20   ;;  %s1738_s19 = sphi %s1780_s19, %s3013_s19   ;;  %s1734_s18 = sphi %s1778_s18, %s3012_s18   ;;  %s1730_s17 = sphi %s1776_s17, %s3011_s17   ;;  %s1726_s16 = sphi %s1774_s16, %s3010_s16   ;;  %s1722_s15 = sphi %s1772_s15, %s3009_s15  }
   0x9   : > { %p37_p0 = scmp.ge.s32.totalorder %s35_s22, 2  ;;  %s42_s23 = sadd.s32 1, %s1730_s17 }
   0xa   : > { %p49_p1 = scmp.ne.s32.totalorder %s1730_s17, %s1726_s16  ;;  %p50_p2 = scmp.eq.s32.totalorder %s1742_s20, 0 }
   0xb   : > { %s3015_s22 = smov (%p37_p0, %s35_s22), 0  ;;  %p55_p4 = scmp.ne.s32.totalorder %s1726_s16, %s1722_s15 }
   0xc   : > { %p51_p3 = por %p50_p2, %p49_p1  ;;  %s39_s24 = ssub.s32 %s1738_s19, %s3015_s22 }
   0xd   : > { %p56_p5 = scmp.eq.s32.totalorder %s2930_s21, 0  ;;  %p40_p6 = scmp.eq.s32.totalorder %s39_s24, 0 }
   0xe   : > { %p1511_p8 = scmp.lt.s32.totalorder %s1742_s20, 2  ;;  %s1822_s27 = sand.u32 1, %s1730_s17  }
   0xf   : > { %p1813_p7 = por %p56_p5, %p55_p4  ;;  %s202_s29 = sand.u32 1, %s1742_s20  }
  0x10   : > { %s1819_s26 = scalar_select %p40_p6, %s1730_s17, %s42_s23  }
  0x11   : > { %p1824_p9 = pnand %p1511_p8, %p51_p3  ;;  %s1347_s30 = sshll.u32 %s1822_s27, 3 }
  0x12   : > { %s1485_s5 = sshll.u32 %s1738_s19, 3  ;;  %s206_s9 = scalar_lea.vmem [#allocation5], %s1347_s30 }
  0x13   : > { %s213_s8 = scalar_lea.hbm %s2926_s1, %s1485_s5  ;;  %s217_s10 = sshll.u32 %s206_s9, 4  ;;  %s218_s10 = int_to_ptr.vmem [resolvable:$true] %s217_s10 }
  0x14   : > { %s215_s11 = sshll.u32 %s213_s8, 4  ;;  %p1352_p10 = scmp.ge.s32.totalorder %s1742_s20, 1  ;;  %s216_s11 = int_to_ptr.hbm [resolvable:$true] %s215_s11 }
  0x15   : > { %s203_s12 = scalar_lea.sflag [#allocation6], %s202_s29  ;;  %p258_p11 = scmp.lt.s32.totalorder %s1742_s20, 3 }
  0x16   : > { %1504 = dma.hbm_to_vmem [thread:$0]  (!%p1824_p9), %s216_s11, 128, %s218_s10, %s203_s12  }
  0x17   : > { %p1838_p12 = pnand %p1352_p10, %p258_p11  ;;  %s191_s23 = scalar_lea.hbm %s2925_s0, %s1738_s19 }
  0x18   : > { %s188_s24 = scalar_lea.vmem [#allocation3], %s1822_s27  ;;  %s193_s5 = sshll.u32 %s191_s23, 4  ;;  %s194_s5 = int_to_ptr.hbm [resolvable:$true] %s193_s5 }
  0x19   : > { %s195_s30 = sshll.u32 %s188_s24, 4  ;;  %s186_s29 = scalar_lea.sflag [#allocation4], %s1822_s27  ;;  %s196_s30 = int_to_ptr.vmem [resolvable:$true] %s195_s30 }
  0x1a   : > { %1501 = dma.hbm_to_vmem [thread:$0]  (!%p1824_p9), %s194_s5, 16, %s196_s30, %s186_s29  }
  0x1b   : > { %s230_s8 = scalar_lea.hbm %s2927_s2, %s1738_s19  ;;  %s227_s9 = scalar_lea.vmem [#allocation7], %s1822_s27 }
  0x1c   : > { %s234_s10 = sshll.u32 %s227_s9, 4  ;;  %s232_s11 = sshll.u32 %s230_s8, 4  ;;  %s235_s10 = int_to_ptr.vmem [resolvable:$true] %s234_s10  ;;  %s233_s11 = int_to_ptr.hbm [resolvable:$true] %s232_s11 }
  0x1d   : > { %1507 = dma.hbm_to_vmem [thread:$0]  (!%p1824_p9), %s233_s11, 16, %s235_s10, %s203_s12  }
  0x1e   : > { %s1350_s14 = sshll.u32 %s1822_s27, 2  ;;  %s1351_s15 = sshll.u32 %s1738_s19, 2 }
  0x1f   : > { %s249_s21 = scalar_lea.hbm %s2928_s3, %s1351_s15  ;;  %s245_s5 = scalar_lea.vmem [#allocation8], %s1350_s14 }
  0x20   : > { %s251_s30 = sshll.u32 %s249_s21, 4  ;;  %s253_s29 = sshll.u32 %s245_s5, 4  ;;  %s252_s30 = int_to_ptr.hbm [resolvable:$true] %s251_s30  ;;  %s254_s29 = int_to_ptr.vmem [resolvable:$true] %s253_s29 }
  0x21   : > { %s242_s6 = scalar_lea.sflag [#allocation9], %s1822_s27  ;;  %262 = sbr.rel (%p1838_p12) target bundleno = 673 (0x2a1), region = 36 }
  0x22   : > { %1510 = dma.hbm_to_vmem [thread:$0]  (!%p1824_p9), %s252_s30, 64, %s254_s29, %s242_s6  }
  0x23   : > { %s1868_s12 = sand.u32 (!%p1838_p12), 1, %s1726_s16  }
  0x24   : > { %s265_s7 = scalar_lea.sflag (!%p1838_p12), [#allocation4], %s1868_s12  ;;  %s267_s8 = scalar_lea.vmem (!%p1838_p12), [#allocation3], %s1868_s12 }
  0x26   : > { %1709 = dma.done.wait (%p1813_p7), %s265_s7, 16  }
  0x27   : > { %1711 = vsyncadd (%p1813_p7), %s265_s7, 4294967280  ;;  %s2969_s21 = sadd.s32 4294967295, %s1742_s20   ;;  %s1353_s28 = sshll.u32 %s1868_s12, 3 }
  0x28   : > { %s273_s27 = sand.u32 1, %s2969_s21   ;;  %s1879_s9 = scalar_lea.vmem [#allocation5], %s1353_s28 }
  0x29   : > { %s274_s13 = scalar_lea.sflag [#allocation6], %s273_s27 }
  0x2a   : > { %1713 = dma.done.wait (%p1813_p7), %s274_s13, 144  }
  0x2b   : > { %1715 = vsyncadd (%p1813_p7), %s274_s13, 4294967152  ;;  %s1354_s10 = sshll.u32 %s1868_s12, 2  ;;  %s286_s11 = scalar_lea.vmem [#allocation7], %s1868_s12 }
  0x2c   : > { %s293_s14 = scalar_lea.sflag [#allocation9], %s1868_s12  ;;  %s1888_s15 = scalar_lea.vmem [#allocation8], %s1354_s10 }
  0x2d   : > { %1717 = dma.done.wait (%p1813_p7), %s293_s14, 64  }
  0x2e   : > { %1719 = vsyncadd (%p1813_p7), %s293_s14, 4294967232  ;;  %p334_p13 = scmp.lt.s32.totalorder %s1734_s18, 1  ;;  %v1744_v0 = vmov 0.0   ;;  %v342_v1 = vld [vmem:[%s267_s8] sm:$0x1]  ;;  %vm352_vm2 = vcmask 1040384  }
  0x2f   : > { %341 = vst [vmem:[#allocation2] sm:$0xf] %v1744_v0  ;;  %vm348_vm0 = vcmp.ge.s32.totalorder %v342_v1, 0  ;;  %vm349_vm1 = vcmp.lt.s32.totalorder %v342_v1, 256 }
  0x30   : > { %s3017_s18 = smov (!%p334_p13, %s1734_s18), 1  ;;  %vm350_vm3 = vmand %vm348_vm0, %vm349_vm1 }
  0x31   : > { %s336_s30 = scalar_lea.vmem %s2929_s4, %s3017_s18  ;;  %v351_v2 = vsel %vm350_vm3, 1.0, %v1744_v0 }
  0x32   : > { %v353_v3 = vsel %vm352_vm2, %v351_v2, -inf }
  0x33   : > { %354 = vmax.xlane.f32.xlu0 %v353_v3 }
  0xa6   : > { %v355_v4 = vpop.xlane.xlu0 %354 }
  0xa7   : > { %v356_v5 = vrot.slane %v355_v4, 4 }
  0xa9   : > { %v357_v6 = vmax.f32 %v355_v4, %v356_v5 }
  0xab   : > { %v358_v7 = vrot.slane %v357_v6, 2 }
  0xad   : > { %v359_v8 = vmax.f32 %v357_v6, %v358_v7 }
  0xaf   : > { %v360_v9 = vrot.slane %v359_v8, 1 }
  0xb1   : > { %v361_v10 = vmax.f32 %v359_v8, %v360_v9 }
  0xb3   : > { %1486 = vpush %v361_v10 }
  0xe4   : > { %s1487_s25 = spop %1486 }
  0xe5   : > { %p363_p0 = scmp.gt.f32.partialorder %s1487_s25, 0.0 }
  0xe6   : > { %v367_v11 = vlaneseq (%p363_p0)  ;;  %v1904_v13 = vperm.slane (%p363_p0), %v342_v1, 0  ;;  %v1745_v22 = vmov (%p363_p0), 1.0   ;;  %v1746_v23 = vmov (%p363_p0), 0.0   ;;  %v497_v1 = vld [vmem:[%s1879_s9] sm:$0xff] (%p363_p0) }
  0xe7   : > { %366 = sbr.rel (!%p363_p0) target bundleno = 479 (0x1df), region = 60  ;;  %500 = vst [vmem:[#allocation1] ss:$2 sm:$0xff] (%p363_p0), %v497_v1 }
  0xe8   : > { %v1902_v12 = vshrl.u32 (%p363_p0), %v367_v11, 7 }
  0xea   : > { %v1907_v14 = vadd.s32 (%p363_p0), 120, %v1902_v12  ;;  %v1910_v15 = vadd.s32 (%p363_p0), 112, %v1902_v12  ;;  %v1913_v16 = vadd.s32 (%p363_p0), 104, %v1902_v12  ;;  %v1916_v17 = vadd.s32 (%p363_p0), 96, %v1902_v12 }
  0xeb   : > { %v1919_v18 = vadd.s32 (%p363_p0), 88, %v1902_v12  ;;  %v1922_v19 = vadd.s32 (%p363_p0), 80, %v1902_v12  ;;  %v1925_v20 = vadd.s32 (%p363_p0), 72, %v1902_v12  ;;  %v1928_v21 = vadd.s32 (%p363_p0), 64, %v1902_v12 }
  0xec   : > { %vm416_vm4 = vcmp.eq.s32.totalorder %v1907_v14, %v1904_v13  ;;  %vm415_vm5 = vcmp.eq.s32.totalorder %v1910_v15, %v1904_v13  ;;  %vm414_vm6 = vcmp.eq.s32.totalorder %v1913_v16, %v1904_v13  ;;  %vm413_vm7 = vcmp.eq.s32.totalorder %v1916_v17, %v1904_v13 }
  0xed   : > { %1387 = vmatpush.msk.msra.mxu0 %vm416_vm4, %v1745_v22  ;;  %v1370_v24 = vsel %vm416_vm4, 1.0, %v1746_v23  ;;  %v1369_v25 = vsel %vm415_vm5, 1.0, %v1746_v23  ;;  %1403 = vmatpush.msk.msra.mxu3 %vm416_vm4, %v1745_v22  ;;  %vm412_vm8 = vcmp.eq.s32.totalorder %v1919_v18, %v1904_v13  ;;  %v1368_v26 = vsel %vm414_vm6, 1.0, %v1746_v23 }
  0xee   : > { %v1960_v27 = vsub.f32 %v1370_v24, %v1370_v24  ;;  %v1962_v28 = vsub.f32 %v1369_v25, %v1369_v25  ;;  %v1964_v29 = vsub.f32 %v1368_v26, %v1368_v26  ;;  %vm411_vm9 = vcmp.eq.s32.totalorder %v1922_v19, %v1904_v13 }
  0xef   : > { %1388 = vmatpush.msk.msra.mxu0 %vm415_vm5, %v1745_v22  ;;  %1404 = vmatpush.msk.msra.mxu3 %vm415_vm5, %v1745_v22  ;;  %v1367_v30 = vsel %vm413_vm7, 1.0, %v1746_v23  ;;  %vm410_vm10 = vcmp.eq.s32.totalorder %v1925_v20, %v1904_v13  ;;  %v1366_v31 = vsel %vm412_vm8, 1.0, %v1746_v23  ;;  %vm2952_vm11 = vcmp.eq.s32.totalorder %v1928_v21, %v1904_v13 }
  0xf0   : > { %649 = vmatpush.msra.mxu2 %v1960_v27  ;;  %v548_v32 = vand.u32 4294901760, %v1960_v27  ;;  %v554_v33 = vand.u32 4294901760, %v1962_v28  ;;  %v1991_v34 = vsub.f32 %v1367_v30, %v1367_v30  ;;  %v560_v35 = vand.u32 4294901760, %v1964_v29 }
  0xf1   : > { %1389 = vmatpush.msk.msra.mxu0 %vm414_vm6, %v1745_v22  ;;  %1405 = vmatpush.msk.msra.mxu3 %vm414_vm6, %v1745_v22  ;;  %v2002_v36 = vsub.f32 %v1366_v31, %v1366_v31  ;;  %v1365_v37 = vsel %vm411_vm9, 1.0, %v1746_v23  ;;  %v2009_v38 = vadd.s32 56, %v1902_v12  ;;  %v1364_v39 = vsel %vm410_vm10, 1.0, %v1746_v23 }
  0xf2   : > { %652 = vmatpush.msra.mxu2 %v1962_v28  ;;  %v549_v40 = vsub.f32 %v1960_v27, %v548_v32  ;;  %v555_v41 = vsub.f32 %v1962_v28, %v554_v33  ;;  %v561_v42 = vsub.f32 %v1964_v29, %v560_v35  ;;  %v566_v43 = vand.u32 4294901760, %v1991_v34 }
  0xf3   : > { %1390 = vmatpush.msk.msra.mxu0 %vm413_vm7, %v1745_v22  ;;  %1406 = vmatpush.msk.msra.mxu3 %vm413_vm7, %v1745_v22  ;;  %v2034_v44 = vsub.f32 %v1365_v37, %v1365_v37  ;;  %vm2951_vm12 = vcmp.eq.s32.totalorder %v2009_v38, %v1904_v13  ;;  %v572_v45 = vand.u32 4294901760, %v2002_v36  ;;  %v2039_v46 = vsub.f32 %v1364_v39, %v1364_v39 }
  0xf4   : > { %v550_v47 = vand.u32 4294901760, %v549_v40  ;;  %655 = vmatpush.msra.mxu2 %v1964_v29  ;;  %v556_v48 = vand.u32 4294901760, %v555_v41  ;;  %v562_v49 = vand.u32 4294901760, %v561_v42  ;;  %v567_v50 = vsub.f32 %v1991_v34, %v566_v43 }
  0xf5   : > { %1391 = vmatpush.msk.msra.mxu0 %vm412_vm8, %v1745_v22  ;;  %1407 = vmatpush.msk.msra.mxu3 %vm412_vm8, %v1745_v22  ;;  %v573_v51 = vsub.f32 %v2002_v36, %v572_v45  ;;  %v2057_v52 = vadd.s32 48, %v1902_v12  ;;  %v2949_v53 = vand.u32 4294901760, %v2034_v44  ;;  %v1363_v54 = vsel %vm2952_vm11, 1.0, %v1746_v23 }
  0xf6   : > { %551 = vmatpush.msra.mxu1 %v550_v47  ;;  %658 = vmatpush.msra.mxu2 %v1991_v34  ;;  %v568_v55 = vand.u32 4294901760, %v567_v50  ;;  %v2065_v56 = vsub.f32 %v1363_v54, %v1363_v54  ;;  %v2068_v57 = vadd.s32 40, %v1902_v12  ;;  %v2947_v58 = vand.u32 4294901760, %v2039_v46 }
  0xf7   : > { %1392 = vmatpush.msk.msra.mxu0 %vm411_vm9, %v1745_v22  ;;  %v574_v59 = vand.u32 4294901760, %v573_v51  ;;  %1408 = vmatpush.msk.msra.mxu3 %vm411_vm9, %v1745_v22  ;;  %vm2941_vm13 = vcmp.eq.s32.totalorder %v2057_v52, %v1904_v13  ;;  %v579_v60 = vsub.f32 %v2034_v44, %v2949_v53  ;;  %v1362_v61 = vsel %vm2951_vm12, 1.0, %v1746_v23 }
  0xf8   : > { %557 = vmatpush.msra.mxu1 %v556_v48  ;;  %661 = vmatpush.msra.mxu2 %v2002_v36  ;;  %vm2931_vm14 = vcmp.eq.s32.totalorder %v2068_v57, %v1904_v13  ;;  %v585_v62 = vsub.f32 %v2039_v46, %v2947_v58  ;;  %v2094_v63 = vsub.f32 %v1362_v61, %v1362_v61  ;;  %v2097_v0 = vadd.s32 32, %v1902_v12 }
  0xf9   : > { %1393 = vmatpush.msk.msra.mxu0 %vm410_vm10, %v1745_v22  ;;  %v580_v2 = vand.u32 4294901760, %v579_v60  ;;  %1409 = vmatpush.msk.msra.mxu3 %vm410_vm10, %v1745_v22  ;;  %v2945_v3 = vand.u32 4294901760, %v2065_v56  ;;  %v1361_v4 = vsel %vm2941_vm13, 1.0, %v1746_v23  ;;  %v2114_v5 = vadd.s32 24, %v1902_v12 }
  0xfa   : > { %563 = vmatpush.msra.mxu1 %v562_v49  ;;  %664 = vmatpush.msra.mxu2 %v2034_v44  ;;  %v586_v6 = vand.u32 4294901760, %v585_v62  ;;  %vm2932_vm15 = vcmp.eq.s32.totalorder %v2097_v0, %v1904_v13  ;;  %v2119_v7 = vsub.f32 %v1361_v4, %v1361_v4  ;;  %v2944_v8 = vand.u32 4294901760, %v2094_v63 }
  0xfb   : > { %1394 = vmatpush.msk.msra.mxu0 %vm2952_vm11, %v1745_v22  ;;  %1410 = vmatpush.msk.msra.mxu3 %vm2952_vm11, %v1745_v22  ;;  %v591_v9 = vsub.f32 %v2065_v56, %v2945_v3  ;;  %vm2933_vm0 = vcmp.eq.s32.totalorder %v2114_v5, %v1904_v13  ;;  %v1360_v10 = vsel %vm2931_vm14, 1.0, %v1746_v23  ;;  %v2140_v11 = vadd.s32 16, %v1902_v12 }
  0xfc   : > { %569 = vmatpush.msra.mxu1 %v568_v55  ;;  %667 = vmatpush.msra.mxu2 %v2039_v46  ;;  %v597_v24 = vsub.f32 %v2094_v63, %v2944_v8  ;;  %v2146_v25 = vsub.f32 %v1360_v10, %v1360_v10  ;;  %v2942_v26 = vand.u32 4294901760, %v2119_v7  ;;  %v1359_v30 = vsel %vm2932_vm15, 1.0, %v1746_v23 }
  0xfd   : > { %1395 = vmatpush.msk.msra.mxu0 %vm2951_vm12, %v1745_v22  ;;  %v592_v31 = vand.u32 4294901760, %v591_v9  ;;  %1411 = vmatpush.msk.msra.mxu3 %vm2951_vm12, %v1745_v22  ;;  %vm2939_vm1 = vcmp.eq.s32.totalorder %v2140_v11, %v1904_v13  ;;  %v2163_v37 = vsub.f32 %v1359_v30, %v1359_v30  ;;  %v2166_v39 = vadd.s32 8, %v1902_v12 }
  0xfe   : > { %575 = vmatpush.msra.mxu1 %v574_v59  ;;  %670 = vmatpush.msra.mxu2 %v2065_v56  ;;  %v598_v40 = vand.u32 4294901760, %v597_v24  ;;  %v603_v41 = vsub.f32 %v2119_v7, %v2942_v26  ;;  %v2940_v42 = vand.u32 4294901760, %v2146_v25  ;;  %v1358_v47 = vsel %vm2933_vm0, 1.0, %v1746_v23 }
  0xff   : > { %1396 = vmatpush.msk.msra.mxu0 %vm2941_vm13, %v1745_v22  ;;  %1412 = vmatpush.msk.msra.mxu3 %vm2941_vm13, %v1745_v22  ;;  %vm2950_vm2 = vcmp.eq.s32.totalorder %v2166_v39, %v1904_v13  ;;  %v2187_v48 = vsub.f32 %v1358_v47, %v1358_v47  ;;  %vm2946_vm3 = vcmp.eq.s32.totalorder %v1902_v12, %v1904_v13  ;;  %v2937_v49 = vand.u32 4294901760, %v2163_v37 }
 0x100   : > { %581 = vmatpush.msra.mxu1 %v580_v2  ;;  %673 = vmatpush.msra.mxu2 %v2094_v63  ;;  %v604_v50 = vand.u32 4294901760, %v603_v41  ;;  %v609_v51 = vsub.f32 %v2146_v25, %v2940_v42  ;;  %v1357_v54 = vsel %vm2939_vm1, 1.0, %v1746_v23  ;;  %v1356_v55 = vsel %vm2950_vm2, 1.0, %v1746_v23 }
 0x101   : > { %1397 = vmatpush.msk.msra.mxu0 %vm2931_vm14, %v1745_v22  ;;  %1413 = vmatpush.msk.msra.mxu3 %vm2931_vm14, %v1745_v22  ;;  %v2215_v59 = vsub.f32 %v2163_v37, %v2937_v49  ;;  %v2217_v60 = vsub.f32 %v1357_v54, %v1357_v54  ;;  %v2936_v61 = vand.u32 4294901760, %v2187_v48  ;;  %v2220_v62 = vsub.f32 %v1356_v55, %v1356_v55 }
 0x102   : > { %587 = vmatpush.msra.mxu1 %v586_v6  ;;  %676 = vmatpush.msra.mxu2 %v2119_v7  ;;  %v610_v1 = vand.u32 4294901760, %v609_v51  ;;  %v1355_v2 = vsel %vm2946_vm3, 1.0, %v1746_v23  ;;  %v2228_v4 = vadd.s32 248, %v1902_v12  ;;  %v2231_v9 = vadd.s32 240, %v1902_v12 }
 0x103   : > { %1398 = vmatpush.msk.msra.mxu0 %vm2932_vm15, %v1745_v22  ;;  %1414 = vmatpush.msk.msra.mxu3 %vm2932_vm15, %v1745_v22  ;;  %v616_v6 = vand.u32 4294901760, %v2215_v59  ;;  %v621_v10 = vsub.f32 %v2187_v48, %v2936_v61  ;;  %v2935_v24 = vand.u32 4294901760, %v2217_v60  ;;  %v2246_v30 = vsub.f32 %v1355_v2, %v1355_v2 }
 0x104   : > { %593 = vmatpush.msra.mxu1 %v592_v31  ;;  %679 = vmatpush.msra.mxu2 %v2146_v25  ;;  %vm2954_vm14 = vcmp.eq.s32.totalorder %v2228_v4, %v1904_v13  ;;  %v2934_v41 = vand.u32 4294901760, %v2220_v62  ;;  %vm2957_vm15 = vcmp.eq.s32.totalorder %v2231_v9, %v1904_v13  ;;  %v2255_v47 = vadd.s32 232, %v1902_v12 }
 0x105   : > { %1399 = vmatpush.msk.msra.mxu0 %vm2933_vm0, %v1745_v22  ;;  %1415 = vmatpush.msk.msra.mxu3 %vm2933_vm0, %v1745_v22  ;;  %v622_v31 = vand.u32 4294901760, %v621_v10  ;;  %v627_v51 = vsub.f32 %v2217_v60, %v2935_v24  ;;  %v1386_v54 = vsel %vm2954_vm14, 1.0, %v1746_v23  ;;  %v2938_v55 = vand.u32 4294901760, %v2246_v30 }
 0x106   : > { %599 = vmatpush.msra.mxu1 %v598_v40  ;;  %682 = vmatpush.msra.mxu2 %v2163_v37  ;;  %v2277_v59 = vsub.f32 %v2220_v62, %v2934_v41  ;;  %v2279_v2 = vsub.f32 %v1386_v54, %v1386_v54  ;;  %vm430_vm0 = vcmp.eq.s32.totalorder %v2255_v47, %v1904_v13  ;;  %v1385_v10 = vsel %vm2957_vm15, 1.0, %v1746_v23 }
 0x107   : > { %1400 = vmatpush.msk.msra.mxu0 %vm2939_vm1, %v1745_v22  ;;  %1416 = vmatpush.msk.msra.mxu3 %vm2939_vm1, %v1745_v22  ;;  %v628_v40 = vand.u32 4294901760, %v627_v51  ;;  %v2298_v54 = vsub.f32 %v2246_v30, %v2938_v55  ;;  %v2300_v41 = vsub.f32 %v1385_v10, %v1385_v10  ;;  %v2303_v24 = vadd.s32 224, %v1902_v12 }
 0x108   : > { %605 = vmatpush.msra.mxu1 %v604_v50  ;;  %685 = vmatpush.msra.mxu2 %v2187_v48  ;;  %v634_v61 = vand.u32 4294901760, %v2277_v59  ;;  %v2943_v49 = vand.u32 4294901760, %v2279_v2  ;;  %v1384_v51 = vsel %vm430_vm0, 1.0, %v1746_v23  ;;  %v2313_v55 = vadd.s32 216, %v1902_v12 }
 0x109   : > { %1401 = vmatpush.msk.msra.mxu0 %vm2950_vm2, %v1745_v22  ;;  %1417 = vmatpush.msk.msra.mxu3 %vm2950_vm2, %v1745_v22  ;;  %v640_v50 = vand.u32 4294901760, %v2298_v54  ;;  %v2948_v59 = vand.u32 4294901760, %v2300_v41  ;;  %vm429_vm1 = vcmp.eq.s32.totalorder %v2303_v24, %v1904_v13  ;;  %v2327_v10 = vsub.f32 %v1384_v51, %v1384_v51 }
 0x10a   : > { %611 = vmatpush.msra.mxu1 %v610_v1  ;;  %688 = vmatpush.msra.mxu2 %v2217_v60  ;;  %v890_v42 = vsub.f32 %v2279_v2, %v2943_v49  ;;  %vm428_vm13 = vcmp.eq.s32.totalorder %v2313_v55, %v1904_v13  ;;  %v1383_v54 = vsel %vm429_vm1, 1.0, %v1746_v23  ;;  %v2340_v26 = vadd.s32 208, %v1902_v12 }
 0x10b   : > { %1402 = vmatpush.msk.msra.mxu0 %vm2946_vm3, %v1745_v22  ;;  %1418 = vmatpush.msk.msra.mxu3 %vm2946_vm3, %v1745_v22  ;;  %v896_v1 = vsub.f32 %v2300_v41, %v2948_v59  ;;  %v2961_v51 = vand.u32 4294901760, %v2327_v10  ;;  %v2354_v49 = vsub.f32 %v1383_v54, %v1383_v54  ;;  %v1382_v8 = vsel %vm428_vm13, 1.0, %v1746_v23 }
 0x10c   : > { %617 = vmatpush.msra.mxu1 %v616_v6  ;;  %v891_v3 = vand.u32 4294901760, %v890_v42  ;;  %vm427_vm3 = vcmp.eq.s32.totalorder %v2340_v26, %v1904_v13  ;;  %v2364_v58 = vsub.f32 %v1382_v8, %v1382_v8  ;;  %v2367_v59 = vadd.s32 200, %v1902_v12  ;;  %691 = vmatpush.msra.mxu2 %v2220_v62 }
 0x10d   : > { %743 = vmatpush.msrb.mxu0 %v548_v32  ;;  %v897_v54 = vand.u32 4294901760, %v896_v1  ;;  %v902_v53 = vsub.f32 %v2327_v10, %v2961_v51  ;;  %v2956_v6 = vand.u32 4294901760, %v2354_v49  ;;  %v1381_v27 = vsel %vm427_vm3, 1.0, %v1746_v23 }
 0x10e   : > { %623 = vmatpush.msra.mxu1 %v622_v31  ;;  %v2953_v32 = vand.u32 4294901760, %v2364_v58  ;;  %vm426_vm2 = vcmp.eq.s32.totalorder %v2367_v59, %v1904_v13  ;;  %v2383_v8 = vsub.f32 %v1381_v27, %v1381_v27  ;;  %v2386_v42 = vadd.s32 192, %v1902_v12  ;;  %694 = vmatpush.msra.mxu2 %v2246_v30 }
 0x10f   : > { %747 = vmatpush.msrb.mxu0 %v554_v33  ;;  %892 = vmatpush.msrb.mxu3 %v891_v3  ;;  %v903_v1 = vand.u32 4294901760, %v902_v53  ;;  %v908_v31 = vsub.f32 %v2354_v49, %v2956_v6  ;;  %v1380_v28 = vsel %vm426_vm2, 1.0, %v1746_v23  ;;  %v2397_v33 = vadd.s32 184, %v1902_v12  ;;  %v501_v6 = vld.sshfl [vmem:[#allocation1] sm:$0xff pattern:$0x75316420] }
 0x110   : > { %629 = vmatpush.msra.mxu1 %v628_v40  ;;  %v914_v53 = vsub.f32 %v2364_v58, %v2953_v32  ;;  %v2955_v3 = vand.u32 4294901760, %v2383_v8  ;;  %vm425_vm12 = vcmp.eq.s32.totalorder %v2386_v42, %v1904_v13  ;;  %v2407_v27 = vsub.f32 %v1380_v28, %v1380_v28  ;;  %1435 = vmatpush.msk.msrb.mxu2 %vm2954_vm14, %v1745_v22 }
 0x111   : > { %751 = vmatpush.msrb.mxu0 %v560_v35  ;;  %898 = vmatpush.msrb.mxu3 %v897_v54  ;;  %vm2958_vm11 = vcmp.eq.s32.totalorder %v2397_v33, %v1904_v13  ;;  %v1379_v29 = vsel %vm425_vm12, 1.0, %v1746_v23  ;;  %v2420_v35 = vadd.s32 176, %v1902_v12  ;;  %v909_v40 = vand.u32 4294901760, %v908_v31 }
 0x112   : > { %635 = vmatpush.msra.mxu1 %v634_v61  ;;  %v920_v54 = vsub.f32 %v2383_v8, %v2955_v3  ;;  %v2959_v28 = vand.u32 4294901760, %v2407_v27  ;;  %v2428_v32 = vsub.f32 %v1379_v29, %v1379_v29  ;;  %1436 = vmatpush.msk.msrb.mxu2 %vm2957_vm15, %v1745_v22  ;;  %v1378_v34 = vsel %vm2958_vm11, 1.0, %v1746_v23 }
 0x113   : > { %755 = vmatpush.msrb.mxu0 %v566_v43  ;;  %904 = vmatpush.msrb.mxu3 %v903_v1  ;;  %vm423_vm14 = vcmp.eq.s32.totalorder %v2420_v35, %v1904_v13  ;;  %v2441_v43 = vadd.s32 168, %v1902_v12  ;;  %v2444_v61 = vadd.s32 160, %v1902_v12  ;;  %v915_v31 = vand.u32 4294901760, %v914_v53 }
 0x114   : > { %641 = vmatpush.msra.mxu1 %v640_v50  ;;  %v926_v1 = vsub.f32 %v2407_v27, %v2959_v28  ;;  %v2960_v29 = vand.u32 4294901760, %v2428_v32  ;;  %v2452_v3 = vsub.f32 %v1378_v34, %v1378_v34  ;;  %1437 = vmatpush.msk.msrb.mxu2 %vm430_vm0, %v1745_v22  ;;  %v1377_v36 = vsel %vm423_vm14, 1.0, %v1746_v23 }
 0x115   : > { %759 = vmatpush.msrb.mxu0 %v572_v45  ;;  %vm422_vm15 = vcmp.eq.s32.totalorder %v2441_v43, %v1904_v13  ;;  %vm421_vm11 = vcmp.eq.s32.totalorder %v2444_v61, %v1904_v13  ;;  %v2471_v45 = vadd.s32 152, %v1902_v12  ;;  %v2970_v14 = vand.u32 4294901760, %v2034_v44  ;;  %910 = vmatpush.msrb.mxu3 %v909_v40 }
 0x116   : > { %1419 = vmatpush.msk.msrb.mxu1 %vm416_vm4, %v1745_v22  ;;  %v921_v50 = vand.u32 4294901760, %v920_v54  ;;  %v932_v53 = vsub.f32 %v2428_v32, %v2960_v29  ;;  %v2962_v34 = vand.u32 4294901760, %v2452_v3  ;;  %v2479_v28 = vsub.f32 %v1377_v36, %v1377_v36  ;;  %1438 = vmatpush.msk.msrb.mxu2 %vm429_vm1, %v1745_v22 }
 0x117   : > { %763 = vmatpush.msrb.mxu0 %v2970_v14  ;;  %v1376_v44 = vsel %vm422_vm15, 1.0, %v1746_v23  ;;  %vm420_vm4 = vcmp.eq.s32.totalorder %v2471_v45, %v1904_v13  ;;  %v1375_v40 = vsel %vm421_vm11, 1.0, %v1746_v23  ;;  %v2499_v15 = vand.u32 4294901760, %v501_v6  ;;  %916 = vmatpush.msrb.mxu3 %v915_v31 }
 0x118   : > { %1420 = vmatpush.msk.msrb.mxu1 %vm415_vm5, %v1745_v22  ;;  %v2971_v54 = vand.u32 4294901760, %v2039_v46  ;;  %v927_v36 = vand.u32 4294901760, %v926_v1  ;;  %v938_v14 = vsub.f32 %v2452_v3, %v2962_v34  ;;  %v2963_v29 = vand.u32 4294901760, %v2479_v28  ;;  %1439 = vmatpush.msk.msrb.mxu2 %vm428_vm13, %v1745_v22 }
 0x119   : > { %v2507_v51 = vsub.f32 %v1376_v44, %v1376_v44  ;;  %v2517_v46 = vsub.f32 %v1375_v40, %v1375_v40  ;;  %v2520_v31 = vadd.s32 144, %v1902_v12  ;;  %v1374_v1 = vsel %vm420_vm4, 1.0, %v1746_v23  ;;  %922 = vmatpush.msrb.mxu3 %v921_v50  ;;  %643 = vmatmul.f32.vlgmr.msra.gmra.mxu1 %v2499_v15 }
 0x11a   : > { %767 = vmatpush.msrb.mxu0 %v2971_v54  ;;  %1421 = vmatpush.msk.msrb.mxu1 %vm414_vm6, %v1745_v22  ;;  %v2972_v44 = vand.u32 4294901760, %v2065_v56  ;;  %v933_v16 = vand.u32 4294901760, %v932_v53  ;;  %v944_v54 = vsub.f32 %v2479_v28, %v2963_v29  ;;  %v2532_v34 = vsub.f32 %v1374_v1, %v1374_v1 }
 0x11b   : > { %v2964_v40 = vand.u32 4294901760, %v2507_v51  ;;  %1440 = vmatpush.msk.msrb.mxu2 %vm427_vm3, %v1745_v22  ;;  %v2965_v56 = vand.u32 4294901760, %v2517_v46  ;;  %v2544_v50 = vsub.f32 %v501_v6, %v2499_v15  ;;  %vm419_vm5 = vcmp.eq.s32.totalorder %v2520_v31, %v1904_v13  ;;  %928 = vmatpush.msrb.mxu3 %v927_v36  ;;  %v498_v31 = vld [vmem:[#allocation2] sm:$0xf] }
 0x11c   : > { %771 = vmatpush.msrb.mxu0 %v2972_v44  ;;  %1422 = vmatpush.msk.msrb.mxu1 %vm413_vm7, %v1745_v22  ;;  %v2549_v53 = vadd.s32 136, %v1902_v12  ;;  %v2973_v1 = vand.u32 4294901760, %v2094_v63  ;;  %v939_v17 = vand.u32 4294901760, %v938_v14  ;;  %v961_v29 = vand.u32 4294901760, %v2532_v34 }
 0x11d   : > { %v950_v44 = vsub.f32 %v2507_v51, %v2964_v40  ;;  %v1373_v6 = vsel %vm419_vm5, 1.0, %v1746_v23  ;;  %1441 = vmatpush.msk.msrb.mxu2 %vm426_vm2, %v1745_v22  ;;  %v2572_v63 = vadd.s32 128, %v1902_v12  ;;  %v2974_v36 = vand.u32 4294901760, %v2119_v7  ;;  %934 = vmatpush.msrb.mxu3 %v933_v16 }
 0x11e   : > { %775 = vmatpush.msrb.mxu0 %v2973_v1  ;;  %1423 = vmatpush.msk.msrb.mxu1 %vm412_vm8, %v1745_v22  ;;  %vm418_vm6 = vcmp.eq.s32.totalorder %v2549_v53, %v1904_v13  ;;  %v945_v14 = vand.u32 4294901760, %v944_v54  ;;  %v956_v18 = vsub.f32 %v2517_v46, %v2965_v56  ;;  %v2579_v1 = vsub.f32 %v1373_v6, %v1373_v6 }
 0x11f   : > { %v1372_v40 = vsel %vm418_vm6, 1.0, %v1746_v23  ;;  %1442 = vmatpush.msk.msrb.mxu2 %vm425_vm12, %v1745_v22  ;;  %v539_v7 = vand.u32 4294901760, %v2544_v50  ;;  %vm417_vm7 = vcmp.eq.s32.totalorder %v2572_v63, %v1904_v13  ;;  %v2975_v54 = vand.u32 4294901760, %v2146_v25  ;;  %940 = vmatpush.msrb.mxu3 %v939_v17  ;;  %v502_v25 = vld.sshfl [vmem:[#allocation1 + $0x8] sm:$0xff pattern:$0x75316420] }
 0x120   : > { %779 = vmatpush.msrb.mxu0 %v2974_v36  ;;  %1424 = vmatpush.msk.msrb.mxu1 %vm411_vm9, %v1745_v22  ;;  %v2596_v16 = vsub.f32 %v1372_v40, %v1372_v40  ;;  %v951_v6 = vand.u32 4294901760, %v950_v44  ;;  %v962_v19 = vsub.f32 %v2532_v34, %v961_v29  ;;  %v967_v36 = vand.u32 4294901760, %v2579_v1 }
 0x121   : > { %v1371_v56 = vsel %vm417_vm7, 1.0, %v1746_v23  ;;  %vm2976_vm8 = vcmp.eq.s32.totalorder %v2397_v33, %v1904_v13  ;;  %v2977_v40 = vand.u32 4294901760, %v2163_v37  ;;  %946 = vmatpush.msrb.mxu3 %v945_v14  ;;  %v957_v17 = vand.u32 4294901760, %v956_v18  ;;  %697 = vmatmul.f32.vlgmr.msra.gmra.mxu2 %v2544_v50 }
 0x122   : > { %783 = vmatpush.msrb.mxu0 %v2975_v54  ;;  %1425 = vmatpush.msk.msrb.mxu1 %vm410_vm10, %v1745_v22  ;;  %v968_v23 = vsub.f32 %v2579_v1, %v967_v36  ;;  %v2621_v44 = vsub.f32 %v1371_v56, %v1371_v56  ;;  %vm2978_vm9 = vcmp.eq.s32.totalorder %v1928_v21, %v1904_v13  ;;  %v973_v37 = vand.u32 4294901760, %v2596_v16 }
 0x123   : > { %1443 = vmatpush.msk.msrb.mxu2 %vm2976_vm8, %v1745_v22  ;;  %v540_v20 = vsub.f32 %v2544_v50, %v539_v7  ;;  %v2979_v14 = vand.u32 4294901760, %v2187_v48  ;;  %952 = vmatpush.msrb.mxu3 %v951_v6  ;;  %v963_v56 = vand.u32 4294901760, %v962_v19  ;;  %v2635_v18 = vand.u32 4294901760, %v502_v25 }
 0x124   : > { %787 = vmatpush.msrb.mxu0 %v2977_v40  ;;  %1426 = vmatpush.msk.msrb.mxu1 %vm2978_vm9, %v1745_v22  ;;  %vm2980_vm10 = vcmp.eq.s32.totalorder %v2009_v38, %v1904_v13  ;;  %v2981_v21 = vand.u32 4294901760, %v2217_v60  ;;  %v969_v48 = vand.u32 4294901760, %v968_v23  ;;  %v979_v54 = vand.u32 4294901760, %v2621_v44 }
 0x125   : > { %1444 = vmatpush.msk.msrb.mxu2 %vm423_vm14, %v1745_v22  ;;  %958 = vmatpush.msrb.mxu3 %v957_v17  ;;  %vm2982_vm8 = vcmp.eq.s32.totalorder %v2057_v52, %v1904_v13  ;;  %v541_v38 = vand.u32 4294901760, %v540_v20  ;;  %v974_v60 = vsub.f32 %v2596_v16, %v973_v37  ;;  %v2983_v6 = vand.u32 4294901760, %v2220_v62 }
 0x126   : > { %791 = vmatpush.msrb.mxu0 %v2979_v14  ;;  %1427 = vmatpush.msk.msrb.mxu1 %vm2980_vm10, %v1745_v22  ;;  %v2662_v19 = vsub.f32 %v502_v25, %v2635_v18  ;;  %vm2984_vm9 = vcmp.eq.s32.totalorder %v2068_v57, %v1904_v13  ;;  %v2985_v52 = vand.u32 4294901760, %v2246_v30  ;;  %v980_v62 = vsub.f32 %v2621_v44, %v979_v54 }
 0x127   : > { %1445 = vmatpush.msk.msrb.mxu2 %vm422_vm15, %v1745_v22  ;;  %964 = vmatpush.msrb.mxu3 %v963_v56  ;;  %vm2986_vm10 = vcmp.eq.s32.totalorder %v2097_v0, %v1904_v13  ;;  %v975_v57 = vand.u32 4294901760, %v974_v60  ;;  %v2989_v50 = vand.u32 4294901760, %v2279_v2  ;;  %v3003_v24 = vand.u32 4294901760, %v2452_v3 }
 0x128   : > { %795 = vmatpush.msrb.mxu0 %v2981_v21  ;;  %1428 = vmatpush.msk.msrb.mxu1 %vm2982_vm8, %v1745_v22  ;;  %v880_v30 = vand.u32 4294901760, %v2662_v19  ;;  %vm2987_vm8 = vcmp.eq.s32.totalorder %v2114_v5, %v1904_v13  ;;  %v981_v0 = vand.u32 4294901760, %v980_v62  ;;  %v3004_v26 = vand.u32 4294901760, %v2479_v28 }
 0x129   : > { %1446 = vmatpush.msk.msrb.mxu2 %vm421_vm11, %v1745_v22  ;;  %970 = vmatpush.msrb.mxu3 %v969_v48  ;;  %v3008_v47 = vand.u32 4294901760, %v2517_v46 }
 0x12a   : > { %799 = vmatpush.msrb.mxu0 %v2983_v6  ;;  %1429 = vmatpush.msk.msrb.mxu1 %vm2984_vm9, %v1745_v22  ;;  %vm2988_vm9 = vcmp.eq.s32.totalorder %v2140_v11, %v1904_v13  ;;  %v881_v5 = vsub.f32 %v2662_v19, %v880_v30  ;;  %v2991_v11 = vand.u32 4294901760, %v2300_v41 }
 0x12b   : > { %1447 = vmatpush.msk.msrb.mxu2 %vm420_vm4, %v1745_v22  ;;  %542 = vmatmul.f32.vlgmr.msra.gmra.mxu0 %v541_v38 }
 0x12c   : > { %803 = vmatpush.msrb.mxu0 %v2985_v52  ;;  %1430 = vmatpush.msk.msrb.mxu1 %vm2986_vm10, %v1745_v22  ;;  %vm2990_vm10 = vcmp.eq.s32.totalorder %v2166_v39, %v1904_v13  ;;  %v2995_v39 = vand.u32 4294901760, %v2327_v10 }
 0x12d   : > { %1448 = vmatpush.msk.msrb.mxu2 %vm419_vm5, %v1745_v22  ;;  %976 = vmatpush.msrb.mxu3 %v975_v57 }
 0x12e   : > { %990 = vmatpush.msra.mxu0 %v2279_v2  ;;  %1431 = vmatpush.msk.msrb.mxu1 %vm2987_vm8, %v1745_v22  ;;  %vm2992_vm8 = vcmp.eq.s32.totalorder %v2228_v4, %v1904_v13  ;;  %v882_v2 = vand.u32 4294901760, %v881_v5  ;;  %v2999_v4 = vand.u32 4294901760, %v2364_v58 }
 0x12f   : > { %1449 = vmatpush.msk.msrb.mxu2 %vm418_vm6, %v1745_v22  ;;  %736 = vmatmul.f32.vlgmr.msra.gmra.mxu3 %v539_v7 }
 0x130   : > { %993 = vmatpush.msra.mxu0 %v2300_v41  ;;  %1432 = vmatpush.msk.msrb.mxu1 %vm2988_vm9, %v1745_v22  ;;  %vm2993_vm9 = vcmp.eq.s32.totalorder %v1902_v12, %v1904_v13  ;;  %v2998_v12 = vand.u32 4294901760, %v2354_v49  ;;  %v3007_v41 = vand.u32 4294901760, %v2507_v51 }
 0x131   : > { %1450 = vmatpush.msk.msrb.mxu2 %vm417_vm7, %v1745_v22  ;;  %982 = vmatpush.msrb.mxu3 %v981_v0 }
 0x132   : > { %996 = vmatpush.msra.mxu0 %v2327_v10  ;;  %1433 = vmatpush.msk.msrb.mxu1 %vm2990_vm10, %v1745_v22  ;;  %vm2994_vm10 = vmmov %vm2992_vm8 }
 0x133   : > { %1084 = vmatpush.msra.mxu2 %v2989_v50  ;;  %1467 = vmatpush.msk.msra.mxu3 %vm2992_vm8, %v1745_v22  ;;  %vm2996_vm8 = vcmp.eq.s32.totalorder %v2231_v9, %v1904_v13  ;;  %v3002_v9 = vand.u32 4294901760, %v2428_v32 }
 0x134   : > { %999 = vmatpush.msra.mxu0 %v2354_v49  ;;  %1434 = vmatpush.msk.msrb.mxu1 %vm2993_vm9, %v1745_v22  ;;  %vm2997_vm9 = vmmov %vm2996_vm8  ;;  %v3000_v49 = vand.u32 4294901760, %v2383_v8 }
 0x135   : > { %1088 = vmatpush.msra.mxu2 %v2991_v11  ;;  %1468 = vmatpush.msk.msra.mxu3 %vm2996_vm8, %v1745_v22 }
 0x136   : > { %1002 = vmatpush.msra.mxu0 %v2364_v58  ;;  %1451 = vmatpush.msk.msra.mxu1 %vm2994_vm10, %v1745_v22  ;;  %v3001_v58 = vand.u32 4294901760, %v2407_v27 }
 0x137   : > { %1092 = vmatpush.msra.mxu2 %v2995_v39  ;;  %1469 = vmatpush.msk.msra.mxu3 %vm430_vm0, %v1745_v22 }
 0x138   : > { %1005 = vmatpush.msra.mxu0 %v2383_v8  ;;  %883 = vmatmul.f32.vlgmr.msrb.gmra.mxu2 %v882_v2 }
 0x139   : > { %1452 = vmatpush.msk.msra.mxu1 %vm2997_vm9, %v1745_v22  ;;  %1096 = vmatpush.msra.mxu2 %v2998_v12 }
 0x13a   : > { %1008 = vmatpush.msra.mxu0 %v2407_v27  ;;  %984 = vmatmul.f32.vlgmr.msrb.gmra.mxu3 %v2635_v18 }
 0x13b   : > { %805 = vmatmul.f32.vlgmr.msrb.gmra.mxu0 %v2499_v15  ;;  %1453 = vmatpush.msk.msra.mxu1 %vm430_vm0, %v1745_v22 }
 0x13c   : > { %1100 = vmatpush.msra.mxu2 %v2999_v4  ;;  %1470 = vmatpush.msk.msra.mxu3 %vm429_vm1, %v1745_v22 }
 0x13d   : > { %1011 = vmatpush.msra.mxu0 %v2428_v32  ;;  %842 = vmatmul.f32.vlgmr.msrb.gmra.mxu1 %v2499_v15 }
 0x13e   : > { %1454 = vmatpush.msk.msra.mxu1 %vm429_vm1, %v1745_v22  ;;  %1104 = vmatpush.msra.mxu2 %v3000_v49 }
 0x13f   : > { %1471 = vmatpush.msk.msra.mxu3 %vm428_vm13, %v1745_v22  ;;  %1014 = vmatpush.msra.mxu0 %v2452_v3 }
 0x140   : > { %1455 = vmatpush.msk.msra.mxu1 %vm428_vm13, %v1745_v22  ;;  %1108 = vmatpush.msra.mxu2 %v3001_v58  ;;  %vm3005_vm13 = vcmp.eq.s32.totalorder %v2397_v33, %v1904_v13 }
 0x141   : > { %1472 = vmatpush.msk.msra.mxu3 %vm427_vm3, %v1745_v22  ;;  %1017 = vmatpush.msra.mxu0 %v2479_v28  ;;  %vm3006_vm0 = vmmov %vm3005_vm13 }
 0x142   : > { %1456 = vmatpush.msk.msra.mxu1 %vm427_vm3, %v1745_v22  ;;  %1112 = vmatpush.msra.mxu2 %v3002_v9 }
 0x143   : > { %1473 = vmatpush.msk.msra.mxu3 %vm426_vm2, %v1745_v22  ;;  %1020 = vmatpush.msra.mxu0 %v2507_v51 }
 0x144   : > { %1457 = vmatpush.msk.msra.mxu1 %vm426_vm2, %v1745_v22  ;;  %1116 = vmatpush.msra.mxu2 %v3003_v24 }
 0x145   : > { %1474 = vmatpush.msk.msra.mxu3 %vm425_vm12, %v1745_v22  ;;  %1023 = vmatpush.msra.mxu0 %v2517_v46 }
 0x146   : > { %1458 = vmatpush.msk.msra.mxu1 %vm425_vm12, %v1745_v22  ;;  %1120 = vmatpush.msra.mxu2 %v3004_v26 }
 0x147   : > { %1475 = vmatpush.msk.msra.mxu3 %vm3005_vm13, %v1745_v22  ;;  %1026 = vmatpush.msra.mxu0 %v2532_v34 }
 0x148   : > { %1459 = vmatpush.msk.msra.mxu1 %vm3006_vm0, %v1745_v22  ;;  %1124 = vmatpush.msra.mxu2 %v3007_v41 }
 0x149   : > { %1476 = vmatpush.msk.msra.mxu3 %vm423_vm14, %v1745_v22  ;;  %1029 = vmatpush.msra.mxu0 %v2579_v1 }
 0x14a   : > { %1460 = vmatpush.msk.msra.mxu1 %vm423_vm14, %v1745_v22  ;;  %1128 = vmatpush.msra.mxu2 %v3008_v47 }
 0x14b   : > { %1477 = vmatpush.msk.msra.mxu3 %vm422_vm15, %v1745_v22  ;;  %1032 = vmatpush.msra.mxu0 %v2596_v16 }
 0x14c   : > { %1461 = vmatpush.msk.msra.mxu1 %vm422_vm15, %v1745_v22  ;;  %1132 = vmatpush.msra.mxu2 %v961_v29 }
 0x14d   : > { %1478 = vmatpush.msk.msra.mxu3 %vm421_vm11, %v1745_v22  ;;  %1035 = vmatpush.msra.mxu0 %v2621_v44 }
 0x14e   : > { %1038 = vmatmul.f32.vlgmr.msra.gmra.mxu0 %v2662_v19  ;;  %1462 = vmatpush.msk.msra.mxu1 %vm421_vm11, %v1745_v22 }
 0x14f   : > { %1136 = vmatpush.msra.mxu2 %v967_v36  ;;  %1479 = vmatpush.msk.msra.mxu3 %vm420_vm4, %v1745_v22 }
 0x150   : > { %1463 = vmatpush.msk.msra.mxu1 %vm420_vm4, %v1745_v22 }
 0x151   : > { %1140 = vmatpush.msra.mxu2 %v973_v37  ;;  %1480 = vmatpush.msk.msra.mxu3 %vm419_vm5, %v1745_v22 }
 0x152   : > { %1464 = vmatpush.msk.msra.mxu1 %vm419_vm5, %v1745_v22 }
 0x153   : > { %1144 = vmatpush.msra.mxu2 %v979_v54  ;;  %1481 = vmatpush.msk.msra.mxu3 %vm418_vm6, %v1745_v22 }
 0x154   : > { %1146 = vmatmul.f32.vlgmr.msra.gmra.mxu2 %v2635_v18  ;;  %1465 = vmatpush.msk.msra.mxu1 %vm418_vm6, %v1745_v22 }
 0x155   : > { %1482 = vmatpush.msk.msra.mxu3 %vm417_vm7, %v1745_v22 }
 0x156   : > { %1183 = vmatmul.f32.vlgmr.msra.gmra.mxu3 %v2635_v18  ;;  %1466 = vmatpush.msk.msra.mxu1 %vm417_vm7, %v1745_v22 }
 0x157   : > { %1077 = vmatmul.f32.vlgmr.msra.gmra.mxu1 %v880_v30 }
 0x196   : > { %v644_v55 = vpop.f32.mrf.mxu1 }
 0x1a4   : > { %v698_v51 = vpop.f32.mrf.mxu2 }
 0x1a8   : > { %v543_v59 = vpop.f32.mrf.mxu0 }
 0x1a9   : > { %v645_v10 = vadd.f32 %v644_v55, %v543_v59 }
 0x1ab   : > { %v699_v32 = vadd.f32 %v698_v51, %v645_v10 }
 0x1b2   : > { %v737_v8 = vpop.f32.mrf.mxu3 }
 0x1b3   : > { %v738_v42 = vadd.f32 %v737_v8, %v699_v32 }
 0x1b8   : > { %v806_v33 = vpop.f32.mrf.mxu0 }
 0x1b9   : > { %v807_v3 = vadd.f32 %v806_v33, %v738_v42 }
 0x1ba   : > { %v843_v27 = vpop.f32.mrf.mxu1 }
 0x1bb   : > { %v844_v35 = vadd.f32 %v843_v27, %v807_v3  ;;  %v884_v28 = vpop.f32.mrf.mxu2 }
 0x1bd   : > { %v885_v43 = vadd.f32 %v884_v28, %v844_v35  ;;  %v985_v61 = vpop.f32.mrf.mxu3 }
 0x1bf   : > { %v986_v13 = vadd.f32 %v985_v61, %v885_v43 }
 0x1cb   : > { %v1039_v29 = vpop.f32.mrf.mxu0 }
 0x1cc   : > { %v1040_v22 = vadd.f32 %v1039_v29, %v986_v13 }
 0x1d4   : > { %v1078_v45 = vpop.f32.mrf.mxu1 }
 0x1d5   : > { %v1079_v34 = vadd.f32 %v1078_v45, %v1040_v22 }
 0x1d7   : > { %v1147_v15 = vpop.f32.mrf.mxu2 }
 0x1d8   : > { %v1148_v46 = vadd.f32 %v1147_v15, %v1079_v34 }
 0x1d9   : > { %v1184_v53 = vpop.f32.mrf.mxu3 }
 0x1da   : > { %v1185_v63 = vadd.f32 %v1184_v53, %v1148_v46 }
 0x1dc   : > { %v1187_v1 = vadd.f32 %v1185_v63, %v498_v31 }
 0x1de   : > { %1188 = vst [vmem:[#allocation2] sm:$0xf] %v1187_v1 }
 0x1df PF: > { %v1194_v16 = vld [vmem:[%s1888_s15] sm:$0xf]  ;;  %vm1201_vm11 = vcmask 1043456   ;;  %vm1213_vm12 = vcmask 0  }
 0x1e0   : > { %v1563_v25 = vld [vmem:[%s286_s11] ss:$0 sm:$0xff] }
 0x1e5   : > { %v1193_v7 = vld [vmem:[#allocation2] sm:$0xf] }
 0x1e6   : > { %v1195_v36 = vsub.f32 %v1193_v7, %v1194_v16 }
 0x1e8   : > { %v1196_v40 = vand.u32 2147483647, %v1195_v36 }
 0x1ea   : > { %v1200_v17 = vmul.f32 %v1563_v25, %v1196_v40 }
 0x1ec   : > { %v1202_v23 = vsel %vm1201_vm11, %v1200_v17, 0.0 }
 0x1ed   : > { %1203 = vadd.xlane.f32.xlu0 %v1202_v23 }
 0x260   : > { %v1204_v44 = vpop.xlane.xlu0 %1203 }
 0x261   : > { %v1205_v20 = vrot.slane %v1204_v44, 4 }
 0x263   : > { %v1206_v37 = vadd.f32 %v1205_v20, %v1204_v44 }
 0x265   : > { %v1207_v14 = vrot.slane %v1206_v37, 2 }
 0x267   : > { %v1208_v56 = vadd.f32 %v1207_v14, %v1206_v37 }
 0x269   : > { %v1209_v18 = vrot.slane %v1208_v56, 1 }
 0x26b   : > { %v1210_v21 = vadd.f32 %v1209_v18, %v1208_v56 }
 0x26d   : > { %1488 = vpush %v1210_v21 }
 0x29e   : > { %s1489_s5 = spop %1488 }
 0x29f   : > { %v1212_v48 = vstv %s1489_s5 }
 0x2a0   : > { %1214 = vst.msk [vmem:[%s336_s30] sm:$0x1] %vm1213_vm12, %v1212_v48 }
 0x2a1 PF: > { %s23_s20 = sadd.s32 1, %s1742_s20   ;;  %s3009_s15 = smov %s1726_s16 }
 0x2a2   : > { %p20_p1 = scmp.ge.s32.totalorder %s23_s20, 4   ;;  %s3010_s16 = smov %s1730_s17 }
 0x2a3   : > { %s3011_s17 = smov %s1819_s26  ;;  %s3012_s18 = smov %s1738_s19 }
 0x2a4   : > { %s3013_s19 = smov %s3015_s22  ;;  %22 = sbr.rel (!%p20_p1) target bundleno = 8 (0x8), region = 125 }
 0x2a9   :  { %1232 = vsyncpa [#allocation4], 1 }
 0x2aa   :  { %1234 = vsyncpa [#allocation4 + $0x1], 1 }
 0x2ab   :  { %1235 = vsyncpa [#allocation6], 1 }
 0x2ac   :  { %1237 = vsyncpa [#allocation6 + $0x1], 1 }
 0x2ad   :  { %1238 = vsyncpa [#allocation9], 1 }
 0x2ae   :  { %1240 = vsyncpa [#allocation9 + $0x1], 1 }

</bundles_post_ra>
